<compile_context>
chip_gen: v7x
topology: tpu7x:2x2x1
jax: 0.10.0
libtpu: 0.0.40
codegen_flags: <defaults>
</compile_context>

<pallas_src>
import functools

import jax
import jax.numpy as jnp
from jax.experimental import pallas as pl
from jax.experimental.pallas import tpu as pltpu


_VMEM_LIMIT_BYTES = 48 * 1024 * 1024      # safe on v7x (64 MiB/TC) and v5e/v6e
_CONV_WORKSET_BYTES = 28 * 1024 * 1024    # target per-step VMEM working set
_POOL_WORKSET_BYTES = 24 * 1024 * 1024
_MAX_CONV_TILE_ROWS = 32


# -----------------------------------------------------------------------------
# Conv 3x3 (pad=1, stride=1) + bias + ReLU
# -----------------------------------------------------------------------------
def _conv_compute(x_slab, w_ref, b_ref, o_ref):
    # x_slab: (TH+2, W+2, Cin) f32 halo slab
    # w_ref : (9*Cin, Cout)     bf16 weights (dy, dx, cin) row-major
    # b_ref : (1, Cout)         f32 bias
    # o_ref : (1, TH, W, Cout)  output tile
    _, th, w, cout = o_ref.shape
    cin = x_slab.shape[-1]
    # im2col: 9 shifted taps concatenated on the lane axis -> one wide-K matmul
    taps = [x_slab[dy:dy + th, dx:dx + w, :]
            for dy in range(3) for dx in range(3)]
    patches = jnp.concatenate(taps, axis=-1).reshape(th * w, 9 * cin)
    acc = jnp.dot(patches.astype(jnp.bfloat16), w_ref[...],
                  preferred_element_type=jnp.float32)
    acc = jnp.maximum(acc + b_ref[...], 0.0)          # fused bias + ReLU (f32)
    o_ref[...] = acc.reshape(1, th, w, cout).astype(o_ref.dtype)


def _conv_kernel_full(x_ref, w_ref, b_ref, o_ref):
    # whole (padded) image is the slab
    _conv_compute(x_ref[0], w_ref, b_ref, o_ref)


def _conv_kernel_tiled(xm_ref, xh_ref, w_ref, b_ref, o_ref):
    # main TH rows + 2 halo rows below -> (TH+2, W+2, Cin) slab
    slab = jnp.concatenate([xm_ref[0], xh_ref[0]], axis=0)
    _conv_compute(slab, w_ref, b_ref, o_ref)


def _pick_conv_tile_rows(H, W, Cin, Cout):
    """Largest even divisor of H whose per-step working set fits the budget."""
    per_row = ((W + 2) * Cin * 4 * 2       # input slab blocks (f32, double-buffered)
               + W * 9 * Cin * 6           # f32 im2col tile + bf16 copy
               + W * Cout * 4 * 3)         # f32 accumulator + output block (x2)
    fixed = 9 * Cin * Cout * 2 * 2 + Cout * 4 * 2   # weights (bf16, x2) + bias
    cap = max(1, (_CONV_WORKSET_BYTES - fixed) // per_row)
    cap = min(int(cap), _MAX_CONV_TILE_ROWS)
    if H <= cap:
        return H
    th = 0
    for cand in range(2, cap + 1, 2):
        if H % cand == 0:
            th = cand
    # TODO(synk): large odd/prime H falls back to whole-image blocks; a manual
    # halo-DMA path would be needed to tile those cases.
    return th if th > 0 else H


def conv3x3_relu(x, w, b, *, tile_rows=None):
    """x: (N,H,W,Cin) f32 NHWC; w: (3,3,Cin,Cout) bf16; b: (Cout,) f32."""
    N, H, W, Cin = x.shape
    Cout = w.shape[-1]
    th = tile_rows if tile_rows is not None else _pick_conv_tile_rows(H, W, Cin, Cout)

    xp = jnp.pad(x, ((0, 0), (1, 1), (1, 1), (0, 0)))        # spatial pad = 1
    w2d = w.astype(jnp.bfloat16).reshape(9 * Cin, Cout)      # (dy,dx,cin) row-major
    b2 = b.astype(jnp.float32).reshape(1, Cout)
    out_shape = jax.ShapeDtypeStruct((N, H, W, Cout), x.dtype)

    if th >= H:
        # one block per batch element (small images / odd H)
        return pl.pallas_call(
            _conv_kernel_full,
            out_shape=out_shape,
            grid=(N,),
            in_specs=[
                pl.BlockSpec((1, H + 2, W + 2, Cin), lambda n: (n, 0, 0, 0)),
                pl.BlockSpec((9 * Cin, Cout), lambda n: (0, 0)),
                pl.BlockSpec((1, Cout), lambda n: (0, 0)),
            ],
            out_specs=pl.BlockSpec((1, H, W, Cout), lambda n: (n, 0, 0, 0)),
            compiler_params=pltpu.CompilerParams(
                dimension_semantics=("parallel",),
                vmem_limit_bytes=_VMEM_LIMIT_BYTES),
        )(xp, w2d, b2)

    assert th % 2 == 0 and H % th == 0, (H, th)
    half = th // 2
    # main block = rows [h*th, h*th+th) of the padded input,
    # halo block = rows [(h+1)*th, (h+1)*th + 2)  (blocked index with size 2)
    return pl.pallas_call(
        _conv_kernel_tiled,
        out_shape=out_shape,
        grid=(N, H // th),
        in_specs=[
            pl.BlockSpec((1, th, W + 2, Cin), lambda n, h: (n, h, 0, 0)),
            pl.BlockSpec((1, 2, W + 2, Cin), lambda n, h: (n, (h + 1) * half, 0, 0)),
            pl.BlockSpec((9 * Cin, Cout), lambda n, h: (0, 0)),
            pl.BlockSpec((1, Cout), lambda n, h: (0, 0)),
        ],
        out_specs=pl.BlockSpec((1, th, W, Cout), lambda n, h: (n, h, 0, 0)),
        compiler_params=pltpu.CompilerParams(
            dimension_semantics=("parallel", "parallel"),
            vmem_limit_bytes=_VMEM_LIMIT_BYTES),
    )(xp, xp, w2d, b2)


# -----------------------------------------------------------------------------
# MaxPool 2x2 stride 2 — fully in-kernel (single read of the block)
# -----------------------------------------------------------------------------
def _maxpool_kernel(x_ref, o_ref):
    _, th, w, c = x_ref.shape
    x = x_ref[0]                                            # (th, w, c)
    xh = jnp.max(x.reshape(th // 2, 2, w, c), axis=1)       # reduce over row pairs
    o_ref[0] = jnp.max(xh.reshape(th // 2, w // 2, 2, c), axis=2)  # column pairs


def _pick_pool_tile_rows(H, W, C):
    per_row = W * C * 4 * 3
    cap = max(2, _POOL_WORKSET_BYTES // per_row)
    if H <= cap:
        return H
    th = 2
    for cand in range(2, int(cap) + 1, 2):
        if H % cand == 0:
            th = cand
    return th


def maxpool2x2(x):
    """x: (N, H, W, C) NHWC -> (N, H//2, W//2, C), exact nn.MaxPool2d(2,2)."""
    N, H, W, C = x.shape
    Ho, Wo = H // 2, W // 2
    if H % 2 or W % 2:                      # PyTorch floor behaviour for odd sizes
        x = x[:, :Ho * 2, :Wo * 2, :]
    Hc, Wc = Ho * 2, Wo * 2
    th = _pick_pool_tile_rows(Hc, Wc, C)
    return pl.pallas_call(
        _maxpool_kernel,
        out_shape=jax.ShapeDtypeStruct((N, Ho, Wo, C), x.dtype),
        grid=(N, Hc // th),
        in_specs=[pl.BlockSpec((1, th, Wc, C), lambda n, h: (n, h, 0, 0))],
        out_specs=pl.BlockSpec((1, th // 2, Wo, C), lambda n, h: (n, h, 0, 0)),
        compiler_params=pltpu.CompilerParams(
            dimension_semantics=("parallel", "parallel"),
            vmem_limit_bytes=_VMEM_LIMIT_BYTES),
    )(x)


# -----------------------------------------------------------------------------
# Parameters (deterministic, PyTorch-default-style uniform fan-in scaling)
# -----------------------------------------------------------------------------
_CONV_SPECS = [
    ("1_1", 3, 64), ("1_2", 64, 64),
    ("2_1", 64, 128), ("2_2", 128, 128),
    ("3_1", 128, 256), ("3_2", 256, 256), ("3_3", 256, 256), ("3_4", 256, 256),
    ("4_1", 256, 512), ("4_2", 512, 512), ("4_3", 512, 512), ("4_4", 512, 512),
    ("5_1", 512, 512), ("5_2", 512, 512), ("5_3", 512, 512), ("5_4", 512, 512),
]


def init_params(key):
    params = {}
    for i, (name, cin, cout) in enumerate(_CONV_SPECS):
        kw, kb = jax.random.split(jax.random.fold_in(key, i))
        bound = 1.0 / float(cin * 9) ** 0.5
        w = jax.random.uniform(kw, (3, 3, cin, cout), jnp.float32, -bound, bound)
        b = jax.random.uniform(kb, (cout,), jnp.float32, -bound, bound)
        params[name] = (w.astype(jnp.bfloat16), b)   # bf16 weights, f32 bias
    return params


# -----------------------------------------------------------------------------
# Forward pass mirroring VGG19_for_deep_style.forward
# -----------------------------------------------------------------------------
def vgg19_deep_style_forward(x_nchw, params, out_layers):
    x = jnp.transpose(x_nchw, (0, 2, 3, 1))     # NCHW -> NHWC for the TPU kernels

    r = {}
    r["1_0"] = x
    r["1_1"] = conv3x3_relu(r["1_0"], *params["1_1"])
    r["1_2"] = conv3x3_relu(r["1_1"], *params["1_2"])
    r["2_0"] = maxpool2x2(r["1_2"])
    r["2_1"] = conv3x3_relu(r["2_0"], *params["2_1"])
    r["2_2"] = conv3x3_relu(r["2_1"], *params["2_2"])
    r["3_0"] = maxpool2x2(r["2_2"])
    r["3_1"] = conv3x3_relu(r["3_0"], *params["3_1"])
    r["3_2"] = conv3x3_relu(r["3_1"], *params["3_2"])
    r["3_3"] = conv3x3_relu(r["3_2"], *params["3_3"])
    r["3_4"] = conv3x3_relu(r["3_3"], *params["3_4"])
    r["4_0"] = maxpool2x2(r["3_4"])
    r["4_1"] = conv3x3_relu(r["4_0"], *params["4_1"])
    r["4_2"] = conv3x3_relu(r["4_1"], *params["4_2"])
    r["4_3"] = conv3x3_relu(r["4_2"], *params["4_3"])
    r["4_4"] = conv3x3_relu(r["4_3"], *params["4_4"])
    r["5_0"] = maxpool2x2(r["4_4"])     # module reuses aPool3to4 here; same op
    r["5_1"] = conv3x3_relu(r["5_0"], *params["5_1"])
    r["5_2"] = conv3x3_relu(r["5_1"], *params["5_2"])
    r["5_3"] = conv3x3_relu(r["5_2"], *params["5_3"])
    r["5_4"] = conv3x3_relu(r["5_3"], *params["5_4"])

    # return in the PyTorch NCHW convention
    return [jnp.transpose(r[name], (0, 3, 1, 2)) for name in out_layers]


# -----------------------------------------------------------------------------
# Main
# -----------------------------------------------------------------------------
if __name__ == "__main__":
    # ---- small correctness self-checks (also exercise the halo-tiled path) ----
    kx, kw, kb = jax.random.split(jax.random.PRNGKey(1), 3)
    xc = jax.random.normal(kx, (1, 8, 8, 16), jnp.float32)
    wc = (jax.random.normal(kw, (3, 3, 16, 32), jnp.float32) * 0.1).astype(jnp.bfloat16)
    bc = jax.random.normal(kb, (32,), jnp.float32) * 0.1
    got = conv3x3_relu(xc, wc, bc, tile_rows=4)              # tiled (halo) path
    ref = jax.lax.conv_general_dilated(
        xc, wc.astype(jnp.float32), (1, 1), "SAME",
        dimension_numbers=("NHWC", "HWIO", "NHWC"))
    ref = jnp.maximum(ref + bc[None, None, None, :], 0.0)
    err = float(jnp.max(jnp.abs(got - ref)))
    assert err < 5e-2, f"conv mismatch, max abs err {err}"

    def _pool_ref(a):
        return jnp.maximum(
            jnp.maximum(a[:, 0::2, 0::2, :], a[:, 0::2, 1::2, :]),
            jnp.maximum(a[:, 1::2, 0::2, :], a[:, 1::2, 1::2, :]))

    xp1 = jax.random.normal(jax.random.PRNGKey(2), (2, 6, 10, 16), jnp.float32)
    assert bool(jnp.array_equal(maxpool2x2(xp1), _pool_ref(xp1)))
    xp2 = jax.random.normal(jax.random.PRNGKey(3), (1, 5, 7, 8), jnp.float32)
    assert bool(jnp.array_equal(maxpool2x2(xp2), _pool_ref(xp2[:, :4, :6, :])))

    # ---- full forward pass ----
    key = jax.random.PRNGKey(0)
    k_x, k_p = jax.random.split(key)

    # Input consistent with the module: batch=2, 3 channels (fixed by conv1_1),
    # 16x16 spatial (divisible by the 4 pools used in the forward pass).
    x = jax.random.normal(k_x, (2, 3, 16, 16), dtype=jnp.float32)
    params = init_params(k_p)

    out_layers = ("1_0", "1_2", "2_2", "3_4", "4_4", "5_4")
    fwd = jax.jit(functools.partial(vgg19_deep_style_forward,
                                    out_layers=out_layers))
    outs = jax.block_until_ready(fwd(x, params))

    expected = {
        "1_0": (2, 3, 16, 16),
        "1_2": (2, 64, 16, 16),
        "2_2": (2, 128, 8, 8),
        "3_4": (2, 256, 4, 4),
        "4_4": (2, 512, 2, 2),
        "5_4": (2, 512, 1, 1),
    }
    for name, o in zip(out_layers, outs):
        assert tuple(o.shape) == expected[name], (name, o.shape)
        assert bool(jnp.all(jnp.isfinite(o)))

    print("KERNEL_OK")
</pallas_src>

<mosaic_0001>
module attributes {stable_mosaic.version = 11 : i64} {
  func.func @_conv_kernel_tiled(%arg0: i32, %arg1: i32, %arg2: memref<1x4x10x16xf32, #tpu.memory_space<vmem>>, %arg3: memref<1x2x10x16xf32, #tpu.memory_space<vmem>>, %arg4: memref<144x32xbf16, #tpu.memory_space<vmem>>, %arg5: memref<1x32xf32, #tpu.memory_space<vmem>>, %arg6: memref<1x4x8x32xf32, #tpu.memory_space<vmem>>) attributes {dimension_semantics = [#tpu.dimension_semantics<parallel>, #tpu.dimension_semantics<parallel>], iteration_bounds = array<i64: 1, 2>, scalar_prefetch = 0 : i64, scratch_operands = 0 : i64, tpu.core_type = #tpu.core_type<tc>, window_params = [{transform_indices = @transform_0, window_bounds = array<i64: 1, 4, 10, 16>}, {transform_indices = @transform_1, window_bounds = array<i64: 1, 2, 10, 16>}, {pipeline_mode = #tpu.pipeline_mode<synchronous>, transform_indices = @transform_2, window_bounds = array<i64: 144, 32>}, {pipeline_mode = #tpu.pipeline_mode<synchronous>, transform_indices = @transform_3, window_bounds = array<i64: 1, 32>}, {transform_indices = @transform_4, window_bounds = array<i64: 1, 4, 8, 32>}]} {
    %c0 = arith.constant 0 : index
    %c0_0 = arith.constant 0 : index
    %c0_1 = arith.constant 0 : index
    %c0_2 = arith.constant 0 : index
    %0 = vector.load %arg2[%c0, %c0_0, %c0_1, %c0_2] : memref<1x4x10x16xf32, #tpu.memory_space<vmem>>, vector<1x4x10x16xf32>
    %1 = vector.shape_cast %0 : vector<1x4x10x16xf32> to vector<4x10x16xf32>
    %c0_3 = arith.constant 0 : index
    %c0_4 = arith.constant 0 : index
    %c0_5 = arith.constant 0 : index
    %c0_6 = arith.constant 0 : index
    %2 = vector.load %arg3[%c0_3, %c0_4, %c0_5, %c0_6] : memref<1x2x10x16xf32, #tpu.memory_space<vmem>>, vector<1x2x10x16xf32>
    %3 = vector.shape_cast %2 : vector<1x2x10x16xf32> to vector<2x10x16xf32>
    %4 = tpu.concatenate %1, %3 in 0 : vector<4x10x16xf32>, vector<2x10x16xf32> -> vector<6x10x16xf32>
    %5 = vector.extract_strided_slice %4 {offsets = [0, 0, 0], sizes = [4, 8, 16], strides = [1, 1, 1]} : vector<6x10x16xf32> to vector<4x8x16xf32>
    %6 = vector.extract_strided_slice %4 {offsets = [0, 1, 0], sizes = [4, 8, 16], strides = [1, 1, 1]} : vector<6x10x16xf32> to vector<4x8x16xf32>
    %7 = vector.extract_strided_slice %4 {offsets = [0, 2, 0], sizes = [4, 8, 16], strides = [1, 1, 1]} : vector<6x10x16xf32> to vector<4x8x16xf32>
    %8 = vector.extract_strided_slice %4 {offsets = [1, 0, 0], sizes = [4, 8, 16], strides = [1, 1, 1]} : vector<6x10x16xf32> to vector<4x8x16xf32>
    %9 = vector.extract_strided_slice %4 {offsets = [1, 1, 0], sizes = [4, 8, 16], strides = [1, 1, 1]} : vector<6x10x16xf32> to vector<4x8x16xf32>
    %10 = vector.extract_strided_slice %4 {offsets = [1, 2, 0], sizes = [4, 8, 16], strides = [1, 1, 1]} : vector<6x10x16xf32> to vector<4x8x16xf32>
    %11 = vector.extract_strided_slice %4 {offsets = [2, 0, 0], sizes = [4, 8, 16], strides = [1, 1, 1]} : vector<6x10x16xf32> to vector<4x8x16xf32>
    %12 = vector.extract_strided_slice %4 {offsets = [2, 1, 0], sizes = [4, 8, 16], strides = [1, 1, 1]} : vector<6x10x16xf32> to vector<4x8x16xf32>
    %13 = vector.extract_strided_slice %4 {offsets = [2, 2, 0], sizes = [4, 8, 16], strides = [1, 1, 1]} : vector<6x10x16xf32> to vector<4x8x16xf32>
    %14 = tpu.concatenate %5, %6, %7, %8, %9, %10, %11, %12, %13 in 2 : vector<4x8x16xf32>, vector<4x8x16xf32>, vector<4x8x16xf32>, vector<4x8x16xf32>, vector<4x8x16xf32>, vector<4x8x16xf32>, vector<4x8x16xf32>, vector<4x8x16xf32>, vector<4x8x16xf32> -> vector<4x8x144xf32>
    %15 = vector.shape_cast %14 : vector<4x8x144xf32> to vector<32x144xf32>
    %16 = arith.truncf %15 : vector<32x144xf32> to vector<32x144xbf16>
    %c0_7 = arith.constant 0 : index
    %c0_8 = arith.constant 0 : index
    %17 = vector.load %arg4[%c0_7, %c0_8] : memref<144x32xbf16, #tpu.memory_space<vmem>>, vector<144x32xbf16>
    %cst = arith.constant dense<0.000000e+00> : vector<32x32xf32>
    %18 = tpu.matmul %16, %17, %cst {dimension_numbers = #tpu.dot_dimension_numbers<[1], [0], [0], [1], [0, 0, 1, 1], [], []>} : vector<32x144xbf16>, vector<144x32xbf16>, vector<32x32xf32> -> vector<32x32xf32>
    %c0_9 = arith.constant 0 : index
    %c0_10 = arith.constant 0 : index
    %19 = vector.load %arg5[%c0_9, %c0_10] : memref<1x32xf32, #tpu.memory_space<vmem>>, vector<1x32xf32>
    %20 = vector.broadcast %19 : vector<1x32xf32> to vector<32x32xf32>
    %21 = arith.addf %18, %20 : vector<32x32xf32>
    %cst_11 = arith.constant 0.000000e+00 : f32
    %22 = vector.broadcast %cst_11 : f32 to vector<32x32xf32>
    %23 = arith.maximumf %21, %22 : vector<32x32xf32>
    %24 = vector.shape_cast %23 : vector<32x32xf32> to vector<1x4x8x32xf32>
    %c0_12 = arith.constant 0 : index
    %c0_13 = arith.constant 0 : index
    %c0_14 = arith.constant 0 : index
    %c0_15 = arith.constant 0 : index
    %25 = vector.load %arg6[%c0_12, %c0_13, %c0_14, %c0_15] : memref<1x4x8x32xf32, #tpu.memory_space<vmem>>, vector<1x4x8x32xf32>
    tpu.vector_store %arg6[%c0_12, %c0_13, %c0_14, %c0_15], %24 {strides = array<i32>} : memref<1x4x8x32xf32, #tpu.memory_space<vmem>>, vector<1x4x8x32xf32>,
    return
  }
  func.func @transform_0(%arg0: i32, %arg1: i32) -> (i32, i32, i32, i32) {
    %c0_i32 = arith.constant 0 : i32
    %c0_i32_0 = arith.constant 0 : i32
    %c0_i32_1 = arith.constant 0 : i32
    return %arg0, %arg1, %c0_i32, %c0_i32_0 : i32, i32, i32, i32
  }
  func.func @transform_1(%arg0: i32, %arg1: i32) -> (i32, i32, i32, i32) {
    %c1_i32 = arith.constant 1 : i32
    %0 = arith.addi %arg1, %c1_i32 : i32
    %c2_i32 = arith.constant 2 : i32
    %1 = arith.muli %0, %c2_i32 : i32
    %c0_i32 = arith.constant 0 : i32
    %c0_i32_0 = arith.constant 0 : i32
    %c0_i32_1 = arith.constant 0 : i32
    return %arg0, %1, %c0_i32, %c0_i32_0 : i32, i32, i32, i32
  }
  func.func @transform_2(%arg0: i32, %arg1: i32) -> (i32, i32) {
    %c0_i32 = arith.constant 0 : i32
    %c0_i32_0 = arith.constant 0 : i32
    %c0_i32_1 = arith.constant 0 : i32
    return %c0_i32, %c0_i32_0 : i32, i32
  }
  func.func @transform_3(%arg0: i32, %arg1: i32) -> (i32, i32) {
    %c0_i32 = arith.constant 0 : i32
    %c0_i32_0 = arith.constant 0 : i32
    %c0_i32_1 = arith.constant 0 : i32
    return %c0_i32, %c0_i32_0 : i32, i32
  }
  func.func @transform_4(%arg0: i32, %arg1: i32) -> (i32, i32, i32, i32) {
    %c0_i32 = arith.constant 0 : i32
    %c0_i32_0 = arith.constant 0 : i32
    %c0_i32_1 = arith.constant 0 : i32
    return %arg0, %arg1, %c0_i32, %c0_i32_0 : i32, i32, i32, i32
  }
}

</mosaic_0001>

<bundles_post_ra>
// kernel: tpu_custom_call.1
= control target key start
LH: loop header
LB: loop body
LE: loop exit
PB: predicated region body
PF: predicated region fallthrough
CT: control target
= control target key end

     0   :  { %9 = vsyncpa [#allocation3], 0  ;;  %s1347_s0 = inlined_call_operand.vmem [shape: f32[1,10,10,16], index: 0, kind: input, shape index: {}]   ;;  %s1348_s1 = inlined_call_operand.vmem [shape: f32[1,10,10,16], index: 1, kind: input, shape index: {}]   ;;  %s1349_s2 = inlined_call_operand.vmem [shape: bf16[144,32], index: 2, kind: input, shape index: {}]   ;;  %s1350_s3 = inlined_call_operand.vmem [shape: f32[1,32], index: 3, kind: input, shape index: {}]   ;;  %s1351_s4 = inlined_call_operand.hbm [shape: f32[1,8,8,32], index: 4, kind: output, shape index: {}]  }
   0x1   :  { %11 = vsyncpa [#allocation3 + $0x1], 0  ;;  %s1081_s15 = smov 0   ;;  %s1083_s16 = smov 0  }
   0x2   :  { %s1085_s17 = smov 0   ;;  %s1087_s18 = smov 0  }
   0x3   :  { %s1089_s19 = smov 0   ;;  %s1091_s20 = smov 0  }
   0x4 LB: > { %s759_s21 = sadd.s32 4294967295, %s1043_s20   ;;  %s760_s22 = sadd.s32 4294967294, %s1043_s20   ;;  %s1043_s20 = sphi %s1091_s20, %s17_s20   ;;  %s1039_s19 = sphi %s1089_s19, %s1358_s19   ;;  %s1035_s18 = sphi %s1087_s18, %s1357_s18   ;;  %s1031_s17 = sphi %s1085_s17, %s1356_s17   ;;  %s1027_s16 = sphi %s1083_s16, %s1355_s16   ;;  %s1023_s15 = sphi %s1081_s15, %s1354_s15  }
   0x5   : > { %s26_s23 = sadd.s32 1, %s1039_s19  ;;  %s140_s24 = sadd.s32 1, %s1031_s17 }
   0x6   : > { %p27_p0 = scmp.ge.s32.totalorder %s26_s23, 2  ;;  %p150_p1 = scmp.ne.s32.totalorder %s1031_s17, %s1027_s16 }
   0x7   : > { %p151_p2 = scmp.eq.s32.totalorder %s759_s21, 1  ;;  %p156_p3 = scmp.ne.s32.totalorder %s1027_s16, %s1023_s15 }
   0x8   : > { %s1360_s23 = smov (%p27_p0, %s26_s23), 0  ;;  %p157_p5 = scmp.eq.s32.totalorder %s760_s22, 1 }
   0x9   : > { %p1121_p4 = por %p151_p2, %p150_p1  ;;  %s136_s26 = ssub.s32 %s1039_s19, %s1360_s23 }
   0xa   : > { %p765_p6 = scmp.ge.s32.totalorder %s1043_s20, 1  ;;  %p138_p7 = scmp.eq.s32.totalorder %s136_s26, 0 }
   0xb   : > { %p1128_p8 = por %p157_p5, %p156_p3  ;;  %p223_p9 = scmp.lt.s32.totalorder %s1043_s20, 3 }
   0xc   : > { %s1134_s28 = scalar_select %p138_p7, %s1031_s17, %s140_s24  }
   0xd   : > { %p224_p10 = pnand %p765_p6, %p223_p9 }
   0xe   : > { %s767_s29 = sshll.u32 (!%p224_p10), %s1035_s18, 2  ;;  %v956_v0 = vld [vmem:[%s1349_s2] sm:$0xff] (!%p224_p10)   ;;  %v1045_v1 = vmov (!%p224_p10), 0   ;;  %v957_v2 = vld [vmem:[%s1349_s2 + $0x8] sm:$0xff] (!%p224_p10)   ;;  %v958_v3 = vld [vmem:[%s1349_s2 + $0x10] sm:$0xff] (!%p224_p10)   ;;  %vm329_vm0 = vcmask (!%p224_p10), 1046528  }
   0xf   : > { %227 = sbr.rel (%p224_p10) target bundleno = 406 (0x196), region = 36  ;;  %p279_p11 = scmp.lt.s32.totalorder (!%p224_p10), %s767_s29, 9  ;;  %583 = vmatprep.subr.bf16.mxu0 (!%p224_p10), %v1045_v1  ;;  %803 = vmatprep.subr.bf16.mxu1 (!%p224_p10), %v1045_v1  ;;  %vm354_vm1 = vcmask (!%p224_p10), 1045504   ;;  %v959_v18 = vld [vmem:[%s1349_s2 + $0x18] sm:$0xff] (!%p224_p10)   ;;  %v960_v38 = vld [vmem:[%s1349_s2 + $0x20] sm:$0xff] (!%p224_p10)   ;;  %v961_v51 = vld [vmem:[%s1349_s2 + $0x28] sm:$0xff] (!%p224_p10)  }
  0x10   : > { %s802_s6 = sadd.s32 (!%p224_p10), 4, %s767_s29  ;;  %584 = vmatpush1.bf16.msra.mxu0 (!%p224_p10), %v956_v0  ;;  %812 = vmatpush1.bf16.msra.mxu1 (!%p224_p10), %v956_v0  ;;  %s1046_s5 = smov (!%p224_p10), 48   ;;  %v962_v57 = vld [vmem:[%s1349_s2 + $0x30] sm:$0xff] (!%p224_p10)   ;;  %vm459_vm2 = vcmask (!%p224_p10), 130048   ;;  %vm464_vm3 = vcmask (!%p224_p10), 261120   ;;  %vm469_vm4 = vcmask (!%p224_p10), 392192  }
  0x11   : > { %p297_p12 = scmp.lt.s32.totalorder (!%p224_p10), %s802_s6, 9  ;;  %585 = vmatprep.subr.bf16.mxu0 (!%p224_p10), %v1045_v1  ;;  %804 = vmatprep.subr.bf16.mxu1 (!%p224_p10), %v1045_v1  ;;  %s1047_s8 = smov (!%p224_p10), 16   ;;  %vm474_vm5 = vcmask (!%p224_p10), 523264   ;;  %vm479_vm6 = vcmask (!%p224_p10), 654336   ;;  %vm484_vm7 = vcmask (!%p224_p10), 785408   ;;  %vm489_vm8 = vcmask (!%p224_p10), 916480  }
  0x12   : > { %s1049_s14 = smov (!%p224_p10), 64   ;;  %s1050_s24 = smov (!%p224_p10), 80  }
  0x13   : > { %s1051_s30 = smov (!%p224_p10), 96  }
  0x14   : > { %586 = vmatpush1.bf16.msra.mxu0 (!%p224_p10), %v957_v2  ;;  %813 = vmatpush1.bf16.msra.mxu1 (!%p224_p10), %v957_v2 }
  0x15   : > { %587 = vmatprep.subr.bf16.mxu0 (!%p224_p10), %v1045_v1  ;;  %805 = vmatprep.subr.bf16.mxu1 (!%p224_p10), %v1045_v1 }
  0x16   : > { %s1362_s29 = smov (!%p279_p11, %s767_s29), 9  ;;  %s1364_s6 = smov (!%p297_p12, %s802_s6), 9 }
  0x17   : > { %s795_s9 = sshll.u32 %s1362_s29, 4  ;;  %s799_s13 = sshll.u32 %s1364_s6, 4 }
  0x18   : > { %s1150_s12 = scalar_lea.vmem %s1347_s0, %s795_s9  ;;  %s1164_s26 = scalar_lea.vmem %s1348_s1, %s799_s13  ;;  %588 = vmatpush1.bf16.msra.mxu0 %v958_v3  ;;  %814 = vmatpush1.bf16.msra.mxu1 %v958_v3  ;;  %v963_v3 = vld [vmem:[%s1349_s2 + $0x38] sm:$0xff]  }
  0x19   : > { %v1156_v4 = vld [vmem:[%s1150_s12 + $0x10] sm:$0xff]  ;;  %v1159_v5 = vld [vmem:[%s1150_s12 + $0x20] sm:$0xff]  ;;  %v310_v10 = vld [vmem:[%s1150_s12 + $0x8] sm:$0x3]  ;;  %589 = vmatprep.subr.bf16.mxu0 %v1045_v1  ;;  %806 = vmatprep.subr.bf16.mxu1 %v1045_v1  ;;  %s1048_s9 = smov 32   ;;  %s268_s6 = sand.u32 1, %s1027_s16  }
  0x1a   : > { %v1167_v6 = vld [vmem:[%s1150_s12 + $0x30] sm:$0xff]  ;;  %v886_v7 = vpack.i.bf16 %v1159_v5, %v1156_v4  ;;  %v1174_v8 = vld [vmem:[%s1164_s26] sm:$0xff]  ;;  %v333_v11 = vrot.slane %v1156_v4, 1  ;;  %v358_v12 = vrot.slane %v1156_v4, 2  ;;  %v312_v14 = vld [vmem:[%s1150_s12 + $0x18] sm:$0x3] }
  0x1b   : > { %v1177_v9 = vld [vmem:[%s1150_s12] sm:$0xff]  ;;  %v891_v13 = vpack.i.bf16 %v1174_v8, %v1167_v6  ;;  %v331_v16 = vrot.slane %v310_v10, 1  ;;  %v334_v19 = vrot.slane %v312_v14, 1  ;;  %v356_v20 = vrot.slane %v310_v10, 2  ;;  %v314_v22 = vld [vmem:[%s1150_s12 + $0x28] sm:$0x3] }
  0x1c   : > { %v330_v15 = vrot.slane %v1177_v9, 1  ;;  %v355_v17 = vrot.slane %v1177_v9, 2  ;;  %887 = vrot.lane.b32.xlu0 %v886_v7, %s1046_s5  ;;  %v359_v21 = vrot.slane %v312_v14, 2  ;;  %v336_v23 = vrot.slane %v1159_v5, 1  ;;  %v316_v25 = vld [vmem:[%s1150_s12 + $0x38] sm:$0x3]  ;;  %590 = vmatpush1.bf16.msra.mxu0 %v959_v18 }
  0x1d   : > { %892 = vrot.lane.b32.xlu1 %v891_v13, %s1046_s5  ;;  %v337_v26 = vrot.slane %v314_v22, 1  ;;  %v339_v27 = vrot.slane %v1167_v6, 1  ;;  %v361_v28 = vrot.slane %v1159_v5, 2  ;;  %v335_v29 = vsel %vm329_vm0, %v333_v11, %v334_v19  ;;  %v318_v33 = vld [vmem:[%s1164_s26 + $0x8] sm:$0x3]  ;;  %815 = vmatpush1.bf16.msra.mxu1 %v959_v18  ;;  %v319_v55 = vld [vmem:[%s1164_s26 + $0x10] sm:$0xff] }
  0x1e   : > { %v332_v24 = vsel %vm329_vm0, %v330_v15, %v331_v16  ;;  %v357_v30 = vsel %vm354_vm1, %v355_v17, %v356_v20  ;;  %v1199_v31 = vsel %vm354_vm1, %v358_v12, %v359_v21  ;;  %v340_v32 = vrot.slane %v316_v25, 1  ;;  %591 = vmatprep.subr.bf16.mxu0 %v1045_v1  ;;  %807 = vmatprep.subr.bf16.mxu1 %v1045_v1  ;;  %v320_v56 = vld [vmem:[%s1164_s26 + $0x18] sm:$0x3]  ;;  %v964_v13 = vld [vmem:[%s1349_s2 + $0x40] sm:$0xff]   ;;  %s1052_s5 = smov 112   ;;  %s766_s7 = sshll.u32 %s268_s6, 5 }
  0x1f   : > { %v896_v34 = vpack.i.bf16 %v335_v29, %v332_v24  ;;  %v906_v35 = vpack.i.bf16 %v1199_v31, %v357_v30  ;;  %v338_v36 = vsel %vm329_vm0, %v336_v23, %v337_v26  ;;  %v362_v37 = vrot.slane %v314_v22, 2  ;;  %s270_s10 = scalar_lea.vmem [#allocation2], %s766_s7  ;;  %s800_s12 = sshll.u32 %s1035_s18, 9 }
  0x20   : > { %v341_v39 = vsel %vm329_vm0, %v339_v27, %v340_v32  ;;  %v364_v40 = vrot.slane %v1167_v6, 2  ;;  %v365_v41 = vrot.slane %v316_v25, 2  ;;  %v393_v44 = vrot.slane %v1174_v8, 1  ;;  %592 = vmatpush1.bf16.msra.mxu0 %v960_v38  ;;  %s656_s11 = sshll.u32 %s270_s10, 4  ;;  %s1301_s21 = scalar_lea.sflag [#allocation3], %s268_s6  ;;  %s1290_s11 = int_to_ptr.vmem [resolvable:$true] %s656_s11 }
  0x21   : > { %897 = vrot.lane.b32.xlu0 %v896_v34, %s1047_s8  ;;  %907 = vrot.lane.b32.xlu1 %v906_v35, %s1048_s9  ;;  %v1211_v42 = vpack.i.bf16 %v341_v39, %v338_v36  ;;  %v363_v43 = vsel %vm354_vm1, %v361_v28, %v362_v37  ;;  %v394_v45 = vrot.slane %v318_v33, 1  ;;  %v408_v47 = vrot.slane %v1174_v8, 2  ;;  %s965_s22 = scalar_lea.vmem %s1290_s11, 512 }
  0x22   : > { %v366_v46 = vsel %vm354_vm1, %v364_v40, %v365_v41  ;;  %v409_v48 = vrot.slane %v318_v33, 2  ;;  %v916_v52 = vpack.i.bf16 %v338_v36, %v335_v29  ;;  %816 = vmatpush1.bf16.msra.mxu1 %v960_v38  ;;  %593 = vmatprep.subr.bf16.mxu0 %v1045_v1  ;;  %v921_v59 = vpack.i.bf16 %v363_v43, %v1199_v31  ;;  %p966_p13 = scmp.ne.s32.totalorder %s1290_s11, %s965_s22 }
  0x23   : > { %v911_v49 = vpack.i.bf16 %v366_v46, %v363_v43  ;;  %v395_v50 = vsel %vm329_vm0, %v393_v44, %v394_v45  ;;  %808 = vmatprep.subr.bf16.mxu1 %v1045_v1  ;;  %v495_v58 = vpack.c.bf16 %v366_v46, %v363_v43  ;;  %v452_v61 = vrot.slane %v319_v55, 2 }
  0x24   : > { %v926_v53 = vpack.i.bf16 %v395_v50, %v341_v39  ;;  %v410_v54 = vsel %vm354_vm1, %v408_v47, %v409_v48  ;;  %594 = vmatpush1.bf16.msra.mxu0 %v961_v51  ;;  %v453_v62 = vrot.slane %v320_v56, 2  ;;  %v437_v63 = vrot.slane %v319_v55, 1  ;;  %p967_p0 = pnand %p966_p13, %p1121_p4 }
  0x25   : > { %902 = vrot.lane.b32.xlu0 %v1211_v42, %s1047_s8  ;;  %912 = vrot.lane.b32.xlu1 %v911_v49, %s1048_s9  ;;  %v931_v60 = vpack.i.bf16 %v410_v54, %v366_v46  ;;  %v438_v0 = vrot.slane %v320_v56, 1  ;;  %v936_v10 = vpack.i.bf16 %v1167_v6, %v1159_v5  ;;  %v941_v11 = vpack.i.bf16 %v319_v55, %v1174_v8 }
  0x26   : > { %817 = vmatpush1.bf16.msra.mxu1 %v961_v51  ;;  %595 = vmatprep.subr.bf16.mxu0 %v1045_v1  ;;  %v454_v2 = vsel %vm354_vm1, %v452_v61, %v453_v62  ;;  %p968_p1 = pneg %p967_p0 }
  0x27   : > { %809 = vmatprep.subr.bf16.mxu1 %v1045_v1  ;;  %784 = vmatprep.mubr.msk.bf16.mxu0 %vm459_vm2, %v495_v58  ;;  %v497_v7 = vpack.c.bf16 %v454_v2, %v410_v54  ;;  %v439_v12 = vsel %vm329_vm0, %v437_v63, %v438_v0 }
  0x28   : > { %596 = vmatpush1.bf16.msra.mxu0 %v962_v57  ;;  %v951_v14 = vpack.i.bf16 %v439_v12, %v395_v50 }
  0x29   : > { %917 = vrot.lane.b32.xlu0 %v916_v52, %s1049_s14  ;;  %927 = vrot.lane.b32.xlu1 %v926_v53, %s1049_s14  ;;  %s1297_s14 = scalar_lea.hbm %s1351_s4, %s800_s12 }
  0x2a   : > { %818 = vmatpush1.bf16.msra.mxu1 %v962_v57  ;;  %597 = vmatprep.subr.bf16.mxu0 %v1045_v1 }
  0x2b   : > { %810 = vmatprep.subr.bf16.mxu1 %v1045_v1  ;;  %785 = vmatprep.mubr.msk.bf16.mxu1 %vm459_vm2, %v497_v7 }
  0x2c   : > { %598 = vmatpush1.bf16.msra.mxu0 %v963_v3 }
  0x2d   : > { %922 = vrot.lane.b32.xlu0 %v921_v59, %s1050_s24  ;;  %932 = vrot.lane.b32.xlu1 %v931_v60, %s1050_s24  ;;  %s1053_s24 = smov [#allocation2]  }
  0x2e   : > { %819 = vmatpush1.bf16.msra.mxu1 %v963_v3  ;;  %599 = vmatprep.subr.bf16.mxu0 %v1045_v1  ;;  %s969_s26 = sshll.u32 %s1053_s24, 4  ;;  %s970_s26 = int_to_ptr.vmem [resolvable:$false] %s969_s26 }
  0x2f   : > { %811 = vmatprep.subr.bf16.mxu1 %v1045_v1  ;;  %s971_s29 = scalar_lea.vmem %s970_s26, 1024  ;;  %p972_p2 = scmp.lt.s32.totalorder %s1290_s11, %s970_s26 }
  0x30   : > { %600 = vmatpush1.bf16.msra.mxu0 %v964_v13  ;;  %p973_p3 = scmp.lt.s32.totalorder %s971_s29, %s965_s22 }
  0x31   : > { %937 = vrot.lane.b32.xlu0 %v936_v10, %s1051_s30  ;;  %942 = vrot.lane.b32.xlu1 %v941_v11, %s1051_s30 }
  0x32   : > { %820 = vmatpush1.bf16.msra.mxu1 %v964_v13  ;;  %p974_p5 = por %p973_p3, %p972_p2 }
  0x34   : > { %p975_p6 = pnand %p974_p5, %p968_p1 }
  0x35   : > { %947 = vrot.lane.b32.xlu0 %v1211_v42, %s1052_s5  ;;  %952 = vrot.lane.b32.xlu1 %v951_v14, %s1052_s5 }
  0x8e   : > { %v888_v8 = vpop.permute.xlu0 %887 }
  0x8f   : > { %v893_v15 = vpop.permute.xlu1 %892  ;;  %v890_v35 = vunpack.i.h.bf16 %v888_v8  ;;  %v889_v36 = vunpack.i.l.bf16 %v888_v8 }
  0x90   : > { %v895_v37 = vunpack.i.h.bf16 %v893_v15  ;;  %v894_v38 = vunpack.i.l.bf16 %v893_v15 }
  0x93   : > { %v898_v16 = vpop.permute.xlu0 %897  ;;  %v908_v17 = vpop.permute.xlu1 %907 }
  0x94   : > { %v900_v20 = vunpack.i.h.bf16 %v898_v16  ;;  %v899_v21 = vunpack.i.l.bf16 %v898_v16  ;;  %v910_v1 = vunpack.i.h.bf16 %v908_v17  ;;  %v909_v26 = vunpack.i.l.bf16 %v908_v17 }
  0x96   : > { %v461_v29 = vsel %vm459_vm2, %v1156_v4, %v900_v20  ;;  %v460_v30 = vsel %vm459_vm2, %v1177_v9, %v899_v21 }
  0x97   : > { %v903_v18 = vpop.permute.xlu0 %902  ;;  %v913_v19 = vpop.permute.xlu1 %912  ;;  %v465_v4 = vsel %vm464_vm3, %v460_v30, %v909_v26  ;;  %v466_v9 = vsel %vm464_vm3, %v461_v29, %v910_v1 }
  0x98   : > { %v905_v22 = vunpack.i.h.bf16 %v903_v18  ;;  %v904_v23 = vunpack.i.l.bf16 %v903_v18  ;;  %v915_v27 = vunpack.i.h.bf16 %v913_v19  ;;  %v914_v28 = vunpack.i.l.bf16 %v913_v19 }
  0x99   : > { %v470_v49 = vsel %vm469_vm4, %v465_v4, %v889_v36  ;;  %v471_v50 = vsel %vm469_vm4, %v466_v9, %v890_v35 }
  0x9a   : > { %v463_v31 = vsel %vm459_vm2, %v1167_v6, %v905_v22  ;;  %v462_v32 = vsel %vm459_vm2, %v1159_v5, %v904_v23  ;;  %v774_v22 = vld [vmem:[%s1350_s3] ss:$0 sm:$0xff] }
  0x9b   : > { %v918_v24 = vpop.permute.xlu0 %917  ;;  %v928_v25 = vpop.permute.xlu1 %927  ;;  %v467_v39 = vsel %vm464_vm3, %v462_v32, %v914_v28  ;;  %v468_v6 = vsel %vm464_vm3, %v463_v31, %v915_v27 }
  0x9c   : > { %v920_v40 = vunpack.i.h.bf16 %v918_v24  ;;  %v919_v5 = vunpack.i.l.bf16 %v918_v24  ;;  %v930_v41 = vunpack.i.h.bf16 %v928_v25  ;;  %v929_v42 = vunpack.i.l.bf16 %v928_v25 }
  0x9d   : > { %v472_v51 = vsel %vm469_vm4, %v467_v39, %v894_v38  ;;  %v473_v52 = vsel %vm469_vm4, %v468_v6, %v895_v37 }
  0x9e   : > { %v475_v57 = vsel %vm474_vm5, %v470_v49, %v919_v5  ;;  %v476_v58 = vsel %vm474_vm5, %v471_v50, %v920_v40  ;;  %v477_v59 = vsel %vm474_vm5, %v472_v51, %v929_v42  ;;  %v478_v60 = vsel %vm474_vm5, %v473_v52, %v930_v41 }
  0x9f   : > { %v923_v33 = vpop.permute.xlu0 %922  ;;  %v933_v34 = vpop.permute.xlu1 %932 }
  0xa0   : > { %v925_v43 = vunpack.i.h.bf16 %v923_v33  ;;  %v924_v44 = vunpack.i.l.bf16 %v923_v33  ;;  %v935_v45 = vunpack.i.h.bf16 %v933_v34  ;;  %v934_v46 = vunpack.i.l.bf16 %v933_v34 }
  0xa2   : > { %v480_v61 = vsel %vm479_vm6, %v475_v57, %v924_v44  ;;  %v481_v62 = vsel %vm479_vm6, %v476_v58, %v925_v43  ;;  %v482_v63 = vsel %vm479_vm6, %v477_v59, %v934_v46  ;;  %v483_v0 = vsel %vm479_vm6, %v478_v60, %v935_v45 }
  0xa3   : > { %v938_v47 = vpop.permute.xlu0 %937  ;;  %v943_v48 = vpop.permute.xlu1 %942 }
  0xa4   : > { %v940_v53 = vunpack.i.h.bf16 %v938_v47  ;;  %v939_v54 = vunpack.i.l.bf16 %v938_v47  ;;  %v945_v55 = vunpack.i.h.bf16 %v943_v48  ;;  %v944_v56 = vunpack.i.l.bf16 %v943_v48 }
  0xa6   : > { %v485_v13 = vsel %vm484_vm7, %v480_v61, %v939_v54  ;;  %v486_v14 = vsel %vm484_vm7, %v481_v62, %v940_v53  ;;  %v487_v8 = vsel %vm484_vm7, %v482_v63, %v944_v56  ;;  %v488_v15 = vsel %vm484_vm7, %v483_v0, %v945_v55 }
  0xa7   : > { %v948_v2 = vpop.permute.xlu0 %947  ;;  %v953_v3 = vpop.permute.xlu1 %952 }
  0xa8   : > { %v950_v7 = vunpack.i.h.bf16 %v948_v2  ;;  %v949_v10 = vunpack.i.l.bf16 %v948_v2  ;;  %v955_v11 = vunpack.i.h.bf16 %v953_v3  ;;  %v954_v12 = vunpack.i.l.bf16 %v953_v3 }
  0xaa   : > { %v490_v16 = vsel %vm489_vm8, %v485_v13, %v949_v10  ;;  %v491_v17 = vsel %vm489_vm8, %v486_v14, %v950_v7  ;;  %v492_v18 = vsel %vm489_vm8, %v487_v8, %v954_v12  ;;  %v493_v19 = vsel %vm489_vm8, %v488_v15, %v955_v11 }
  0xab   : > { %v494_v20 = vpack.c.bf16 %v491_v17, %v490_v16  ;;  %v496_v21 = vpack.c.bf16 %v493_v19, %v492_v18 }
  0xad   : > { %616 = vmatmul.mubr.bf16.vlgmr.msra.gmra.mrb[0].mxu0 %v494_v20  ;;  %624 = vmatmul.mubr.bf16.vlgmr.msra.gmra.mrb[0].mxu1 %v496_v21 }
 0x180   : > { %v617_v23 = vpop.f32.mrb[0].mxu0  ;;  %v625_v24 = vpop.f32.mrb[0].mxu1 }
 0x181   : > { %v618_v25 = vadd.f32 %v774_v22, %v617_v23  ;;  %v619_v1 = vpop.f32.mrb[1].mxu0  ;;  %v626_v26 = vadd.f32 %v774_v22, %v625_v24  ;;  %v627_v27 = vpop.f32.mrb[1].mxu1 }
 0x182   : > { %v620_v28 = vpop.f32.mrb[2].mxu0  ;;  %v628_v29 = vpop.f32.mrb[2].mxu1 }
 0x183   : > { %v632_v30 = vmax.f32 %v618_v25, 0.0  ;;  %v634_v31 = vmax.f32 %v626_v26, 0.0  ;;  %v621_v32 = vadd.f32 %v774_v22, %v620_v28  ;;  %v622_v33 = vpop.f32.mrb[3].mxu0  ;;  %v629_v34 = vadd.f32 %v774_v22, %v628_v29  ;;  %v630_v35 = vpop.f32.mrb[3].mxu1 }
 0x185   : > { %636 = vst.msk [vmem:[%s270_s10] sm:$0xff] %vm464_vm3, %v632_v30  ;;  %638 = vst.msk [vmem:[%s270_s10 + $0x10] sm:$0xff] %vm464_vm3, %v634_v31  ;;  %v633_v36 = vmax.f32 %v621_v32, 0.0  ;;  %v635_v37 = vmax.f32 %v629_v34, 0.0 }
 0x187   : > { %637 = vst.msk [vmem:[%s270_s10 + $0x8] sm:$0xff] %vm464_vm3, %v633_v36  ;;  %639 = vst.msk [vmem:[%s270_s10 + $0x18] sm:$0xff] %vm464_vm3, %v635_v37 }
 0x188   : > { %978 = shalt.err (!%p975_p6)
}
 0x189   : > { %s979_s30 = scalar_lea.hbm %s1297_s14, 512  ;;  %s983_s7 = scalar_lea.hbm %s1351_s4, 1024 }
 0x18a   : > { %p980_p7 = scmp.ne.s32.totalorder %s1297_s14, %s979_s30  ;;  %p984_p11 = scmp.lt.u32.totalorder %s1297_s14, %s1351_s4 }
 0x18b   : > { %p985_p12 = scmp.lt.u32.totalorder %s983_s7, %s979_s30  ;;  %p987_p0 = scmp.lt.u32.totalorder %s979_s30, %s1297_s14 }
 0x18c   : > { %p981_p9 = pnand %p980_p7, %p1121_p4 }
 0x18d   : > { %p986_p13 = por %p985_p12, %p984_p11 }
 0x18e   : > { %p982_p10 = pneg %p981_p9 }
 0x18f   : > { %p988_p1 = por %p987_p0, %p986_p13 }
 0x191   : > { %p989_p2 = pnand %p988_p1, %p982_p10 }
 0x193   : > { %992 = shalt.err (!%p989_p2)
}
 0x194   : > { %s1054_s10 = smov 128   ;;  %s1055_s12 = smov 8  }
 0x195   : > { %821 = dma.vmem_to_hbm [thread:$0]  (%p1121_p4), %s1290_s11, 512, %s1297_s14, %s1301_s21, %s1054_s10, %s1054_s10, %s1055_s12  }
 0x196 PF: > { %p827_p3 = scmp.ge.s32.totalorder %s1043_s20, 2  ;;  %s671_s13 = sand.u32 1, %s1023_s15  }
 0x197   : > { %s672_s18 = scalar_lea.sflag [#allocation3], %s671_s13 }
 0x198   : > { %p824_p5 = pnand %p827_p3, %p1128_p8 }
 0x19a   : > { %1018 = dma.done.wait (!%p824_p5), %s672_s18, 512  }
 0x19b   : > { %1020 = vsyncadd (!%p824_p5), %s672_s18, 4294966784  ;;  %s17_s20 = sadd.s32 1, %s1043_s20   ;;  %s1354_s15 = smov %s1027_s16 }
 0x19c   : > { %p14_p6 = scmp.ge.s32.totalorder %s17_s20, 4   ;;  %s1355_s16 = smov %s1031_s17 }
 0x19d   : > { %s1356_s17 = smov %s1134_s28  ;;  %s1357_s18 = smov %s1039_s19 }
 0x19e   : > { %s1358_s19 = smov %s1360_s23  ;;  %16 = sbr.rel (!%p14_p6) target bundleno = 4 (0x4), region = 74 }
 0x1a5   :  { %677 = vsyncpa [#allocation3], 1 }
 0x1a6   :  { %679 = vsyncpa [#allocation3 + $0x1], 1 }

</bundles_post_ra>
